<compile_context>
chip_gen: v7x
topology: tpu7x:2x2x1
jax: 0.10.0
libtpu: 0.0.40
codegen_flags: <defaults>
</compile_context>

<pallas_src>
import functools

import jax
import jax.numpy as jnp
import numpy as np
from jax import lax
from jax.experimental import pallas as pl
from jax.experimental.pallas import tpu as pltpu

# NN class attributes in the reference.
CENTER = 0.0
DELTA = 1.0

LANE = 128       # lane (minor) tile
SUBLANE = 8      # sublane tile
MAX_TILE_B = 1024


def _round_up(x, m):
    return (x + m - 1) // m * m


def _pad2d(a, rows, cols):
    r, c = a.shape
    return jnp.pad(a, ((0, rows - r), (0, cols - c)))


# ------------------------------- kernel ------------------------------------ #
def _fused_mlp_kernel(x_ref, *refs, num_hidden):
    """One batch-tile of the full forward pass.

    refs = (w0, b0, w1, b1, ..., w_{H-1}, b_{H-1}, w_last, o_ref)
    Weights are pre-transposed to [K, N], so every matmul is canonical
    [M,K] x [K,N] on the MXU.
    """
    o_ref = refs[-1]
    w_last_ref = refs[-2]
    dn = (((1,), (0,)), ((), ()))  # contract h's minor dim with w's major dim

    h = x_ref[...]
    for i in range(num_hidden):
        w = refs[2 * i][...]
        b = refs[2 * i + 1][...]
        y = lax.dot_general(h, w, dimension_numbers=dn,
                            preferred_element_type=jnp.float32)
        h = jnp.tanh(y + b)  # NNLayer's per-column activation == elementwise

    o_ref[...] = lax.dot_general(h, w_last_ref[...], dimension_numbers=dn,
                                 preferred_element_type=jnp.float32)


# --------------------------- one-time parameter prep ----------------------- #
def prepare_params(params, w_last, *, center=CENTER, delta=DELTA):
    """Fold (x - center)/delta into layer 0, transpose weights to [K, N] and
    zero-pad hidden widths to 128 lanes. Input (K of layer 0) and output
    (N of the last layer) feature dims stay UNPADDED; the kernel handles the
    small dims directly. Call once, reuse across forward calls."""
    # NOTE: folding formula assumes scalar center/delta (true for this module).
    w0, b0 = params[0]
    w0_t = jnp.transpose(w0.astype(jnp.float32))              # [in, hidden]
    b0 = jnp.reshape(b0.astype(jnp.float32), (1, -1))
    w0_eff = w0_t / delta
    b0_eff = b0 - (center / delta) * jnp.sum(w0_t, axis=0, keepdims=True)

    ws, bs = [], []
    in_dim, n0 = w0_t.shape
    n0_pad = _round_up(n0, LANE)
    ws.append(_pad2d(w0_eff, in_dim, n0_pad))                  # (in_dim, 128)
    bs.append(_pad2d(b0_eff, 1, n0_pad))                       # (1, 128)
    prev = n0_pad

    for w, b in params[1:]:
        w_t = jnp.transpose(w.astype(jnp.float32))             # [K, N]
        b = jnp.reshape(b.astype(jnp.float32), (1, -1))
        n_pad = _round_up(w_t.shape[1], LANE)
        ws.append(_pad2d(w_t, prev, n_pad))                    # (128, 128)
        bs.append(_pad2d(b, 1, n_pad))
        prev = n_pad

    w_last_t = jnp.transpose(w_last.astype(jnp.float32))       # [K, out_dim]
    w_last_p = _pad2d(w_last_t, prev, w_last_t.shape[1])       # pad K only
    return tuple(ws), tuple(bs), w_last_p


# ------------------------------- forward ----------------------------------- #
def nn_forward(x, ws, bs, w_last_p):
    """Full NN.forward using pre-prepared parameters (see prepare_params)."""
    B, in_dim = x.shape
    out_dim = w_last_p.shape[1]
    num_hidden = len(ws)

    # Batch tiling: sublane-aligned, capped at MAX_TILE_B; when B permits,
    # guarantee >= 2 grid steps so "parallel" shards across both v7x TCs.
    if B <= SUBLANE:
        tb = SUBLANE
    else:
        tb = min(MAX_TILE_B, _round_up(-(-B // 2), SUBLANE))
    B_pad = _round_up(B, tb)

    x = x.astype(jnp.float32)
    if B_pad != B:
        # Only row padding (narrow in_dim stream); padded rows sliced off below.
        x = jnp.pad(x, ((0, B_pad - B), (0, 0)))

    kernel = functools.partial(_fused_mlp_kernel, num_hidden=num_hidden)

    # x block: full (unpadded) feature width -> input DMA is in_dim*4 B/row.
    in_specs = [pl.BlockSpec((tb, in_dim), lambda i: (i, 0))]
    flat_inputs = [x]
    for w, b in zip(ws, bs):
        # Full-array blocks with a constant index_map -> weights stay resident
        # in VMEM across all batch tiles.
        in_specs.append(pl.BlockSpec(w.shape, lambda i: (0, 0)))
        in_specs.append(pl.BlockSpec(b.shape, lambda i: (0, 0)))
        flat_inputs.extend([w, b])
    in_specs.append(pl.BlockSpec(w_last_p.shape, lambda i: (0, 0)))
    flat_inputs.append(w_last_p)

    out = pl.pallas_call(
        kernel,
        out_shape=jax.ShapeDtypeStruct((B_pad, out_dim), jnp.float32),
        grid=(B_pad // tb,),
        in_specs=in_specs,
        # Full (unpadded) output width -> writeback is out_dim*4 B/row and no
        # post-kernel column slice is needed.
        out_specs=pl.BlockSpec((tb, out_dim), lambda i: (i, 0)),
        compiler_params=pltpu.CompilerParams(
            dimension_semantics=("parallel",),
            vmem_limit_bytes=32 * 1024 * 1024,
        ),
    )(*flat_inputs)

    if B_pad != B:
        out = out[:B]
    return out


nn_forward_jit = jax.jit(nn_forward)


# ------------------------- parameter initialization ------------------------ #
def init_params(key, input_size, output_size, num_layers, num_neurons):
    """Deterministic init mirroring the reference (tanh -> xavier + U[0,1) bias)."""
    params = []
    inp = input_size
    for _ in range(num_layers - 1):
        key, kw, kb = jax.random.split(key, 3)
        # xavier_init(size_out, size_in): stddev = 1/sqrt(size_out + size_in),
        # weight shape (size_out, size_in).
        std = 1.0 / np.sqrt(num_neurons + inp)
        w = jax.random.normal(kw, (num_neurons, inp), jnp.float32) * std
        b = jax.random.uniform(kb, (1, num_neurons), jnp.float32)  # torch.rand
        params.append((w, b))
        inp = num_neurons
    key, kw = jax.random.split(key)
    # nn.Linear default init: U(-1/sqrt(fan_in), 1/sqrt(fan_in)), shape (out, in)
    bound = 1.0 / np.sqrt(inp)
    w_last = jax.random.uniform(kw, (output_size, inp), jnp.float32,
                                minval=-bound, maxval=bound)
    return params, w_last


# ------------------------------ reference ---------------------------------- #
def nn_forward_ref(x, params, w_last, center=CENTER, delta=DELTA):
    x = (x - center) / delta
    for w, b in params:
        x = jnp.tanh(x @ w.T + jnp.reshape(b, (1, -1)))
    return x @ w_last.T


if __name__ == "__main__":
    # Shapes consistent with the module: inputSize=4, outputSize=2,
    # numLayers=3 (2 hidden NNLayers + final bias-free linear), numNeurons=32.
    input_size, output_size, num_layers, num_neurons = 4, 2, 3, 32

    key = jax.random.PRNGKey(0)
    key, kx, kp = jax.random.split(key, 3)
    params, w_last = init_params(kp, input_size, output_size, num_layers,
                                 num_neurons)

    # One-time parameter prep (fold/transposition/padding hoisted out of forward).
    ws, bs, w_last_p = prepare_params(params, w_last)

    # Case 1: batch=8 (single tile, no padding/slicing path).
    x1 = jax.random.normal(kx, (8, input_size), jnp.float32)
    out1 = jax.block_until_ready(nn_forward_jit(x1, ws, bs, w_last_p))
    ref1 = nn_forward_ref(x1, params, w_last)
    np.testing.assert_allclose(np.asarray(out1), np.asarray(ref1),
                               rtol=1e-5, atol=1e-5)

    # Case 2: batch=20 (exercises grid=2, row padding and the row slice).
    key, kx2 = jax.random.split(key)
    x2 = jax.random.normal(kx2, (20, input_size), jnp.float32)
    out2 = jax.block_until_ready(nn_forward_jit(x2, ws, bs, w_last_p))
    ref2 = nn_forward_ref(x2, params, w_last)
    np.testing.assert_allclose(np.asarray(out2), np.asarray(ref2),
                               rtol=1e-5, atol=1e-5)

    print("KERNEL_OK")
</pallas_src>

<mosaic_0001>
module attributes {stable_mosaic.version = 11 : i64} {
  func.func @_fused_mlp_kernel(%arg0: i32, %arg1: memref<8x4xf32, #tpu.memory_space<vmem>>, %arg2: memref<4x128xf32, #tpu.memory_space<vmem>>, %arg3: memref<1x128xf32, #tpu.memory_space<vmem>>, %arg4: memref<128x128xf32, #tpu.memory_space<vmem>>, %arg5: memref<1x128xf32, #tpu.memory_space<vmem>>, %arg6: memref<128x2xf32, #tpu.memory_space<vmem>>, %arg7: memref<8x2xf32, #tpu.memory_space<vmem>>) attributes {dimension_semantics = [#tpu.dimension_semantics<parallel>], iteration_bounds = array<i64: 1>, scalar_prefetch = 0 : i64, scratch_operands = 0 : i64, tpu.core_type = #tpu.core_type<tc>, window_params = [{transform_indices = @transform_0, window_bounds = array<i64: 8, 4>}, {pipeline_mode = #tpu.pipeline_mode<synchronous>, transform_indices = @transform_1, window_bounds = array<i64: 4, 128>}, {pipeline_mode = #tpu.pipeline_mode<synchronous>, transform_indices = @transform_2, window_bounds = array<i64: 1, 128>}, {pipeline_mode = #tpu.pipeline_mode<synchronous>, transform_indices = @transform_3, window_bounds = array<i64: 128, 128>}, {pipeline_mode = #tpu.pipeline_mode<synchronous>, transform_indices = @transform_4, window_bounds = array<i64: 1, 128>}, {pipeline_mode = #tpu.pipeline_mode<synchronous>, transform_indices = @transform_5, window_bounds = array<i64: 128, 2>}, {transform_indices = @transform_6, window_bounds = array<i64: 8, 2>}]} {
    %c0 = arith.constant 0 : index
    %c0_0 = arith.constant 0 : index
    %0 = vector.load %arg1[%c0, %c0_0] : memref<8x4xf32, #tpu.memory_space<vmem>>, vector<8x4xf32>
    %c0_1 = arith.constant 0 : index
    %c0_2 = arith.constant 0 : index
    %1 = vector.load %arg2[%c0_1, %c0_2] : memref<4x128xf32, #tpu.memory_space<vmem>>, vector<4x128xf32>
    %c0_3 = arith.constant 0 : index
    %c0_4 = arith.constant 0 : index
    %2 = vector.load %arg3[%c0_3, %c0_4] : memref<1x128xf32, #tpu.memory_space<vmem>>, vector<1x128xf32>
    %cst = arith.constant dense<0.000000e+00> : vector<8x128xf32>
    %3 = tpu.matmul %0, %1, %cst {dimension_numbers = #tpu.dot_dimension_numbers<[1], [0], [0], [1], [0, 0, 1, 1], [], []>} : vector<8x4xf32>, vector<4x128xf32>, vector<8x128xf32> -> vector<8x128xf32>
    %4 = vector.broadcast %2 : vector<1x128xf32> to vector<8x128xf32>
    %5 = arith.addf %3, %4 : vector<8x128xf32>
    %6 = math.tanh %5 : vector<8x128xf32>
    %c0_5 = arith.constant 0 : index
    %c0_6 = arith.constant 0 : index
    %7 = vector.load %arg4[%c0_5, %c0_6] : memref<128x128xf32, #tpu.memory_space<vmem>>, vector<128x128xf32>
    %c0_7 = arith.constant 0 : index
    %c0_8 = arith.constant 0 : index
    %8 = vector.load %arg5[%c0_7, %c0_8] : memref<1x128xf32, #tpu.memory_space<vmem>>, vector<1x128xf32>
    %cst_9 = arith.constant dense<0.000000e+00> : vector<8x128xf32>
    %9 = tpu.matmul %6, %7, %cst_9 {dimension_numbers = #tpu.dot_dimension_numbers<[1], [0], [0], [1], [0, 0, 1, 1], [], []>} : vector<8x128xf32>, vector<128x128xf32>, vector<8x128xf32> -> vector<8x128xf32>
    %10 = vector.broadcast %8 : vector<1x128xf32> to vector<8x128xf32>
    %11 = arith.addf %9, %10 : vector<8x128xf32>
    %12 = math.tanh %11 : vector<8x128xf32>
    %c0_10 = arith.constant 0 : index
    %c0_11 = arith.constant 0 : index
    %13 = vector.load %arg6[%c0_10, %c0_11] : memref<128x2xf32, #tpu.memory_space<vmem>>, vector<128x2xf32>
    %cst_12 = arith.constant dense<0.000000e+00> : vector<8x2xf32>
    %14 = tpu.matmul %12, %13, %cst_12 {dimension_numbers = #tpu.dot_dimension_numbers<[1], [0], [0], [1], [0, 0, 1, 1], [], []>} : vector<8x128xf32>, vector<128x2xf32>, vector<8x2xf32> -> vector<8x2xf32>
    %c0_13 = arith.constant 0 : index
    %c0_14 = arith.constant 0 : index
    %15 = vector.load %arg7[%c0_13, %c0_14] : memref<8x2xf32, #tpu.memory_space<vmem>>, vector<8x2xf32>
    tpu.vector_store %arg7[%c0_13, %c0_14], %14 {strides = array<i32>} : memref<8x2xf32, #tpu.memory_space<vmem>>, vector<8x2xf32>,
    return
  }
  func.func @transform_0(%arg0: i32) -> (i32, i32) {
    %c0_i32 = arith.constant 0 : i32
    %c0_i32_0 = arith.constant 0 : i32
    return %arg0, %c0_i32 : i32, i32
  }
  func.func @transform_1(%arg0: i32) -> (i32, i32) {
    %c0_i32 = arith.constant 0 : i32
    %c0_i32_0 = arith.constant 0 : i32
    %c0_i32_1 = arith.constant 0 : i32
    return %c0_i32, %c0_i32_0 : i32, i32
  }
  func.func @transform_2(%arg0: i32) -> (i32, i32) {
    %c0_i32 = arith.constant 0 : i32
    %c0_i32_0 = arith.constant 0 : i32
    %c0_i32_1 = arith.constant 0 : i32
    return %c0_i32, %c0_i32_0 : i32, i32
  }
  func.func @transform_3(%arg0: i32) -> (i32, i32) {
    %c0_i32 = arith.constant 0 : i32
    %c0_i32_0 = arith.constant 0 : i32
    %c0_i32_1 = arith.constant 0 : i32
    return %c0_i32, %c0_i32_0 : i32, i32
  }
  func.func @transform_4(%arg0: i32) -> (i32, i32) {
    %c0_i32 = arith.constant 0 : i32
    %c0_i32_0 = arith.constant 0 : i32
    %c0_i32_1 = arith.constant 0 : i32
    return %c0_i32, %c0_i32_0 : i32, i32
  }
  func.func @transform_5(%arg0: i32) -> (i32, i32) {
    %c0_i32 = arith.constant 0 : i32
    %c0_i32_0 = arith.constant 0 : i32
    %c0_i32_1 = arith.constant 0 : i32
    return %c0_i32, %c0_i32_0 : i32, i32
  }
  func.func @transform_6(%arg0: i32) -> (i32, i32) {
    %c0_i32 = arith.constant 0 : i32
    %c0_i32_0 = arith.constant 0 : i32
    return %arg0, %c0_i32 : i32, i32
  }
}

</mosaic_0001>

<bundles_post_ra>
// kernel: nn_forward.1
= control target key start
LH: loop header
LB: loop body
LE: loop exit
PB: predicated region body
PF: predicated region fallthrough
CT: control target
= control target key end

     0   :  { %vm36_vm0 = vcmask 1043456   ;;  %vm32_vm1 = vcmask 31744   ;;  %v467_v0 = vmov 0.0   ;;  %vm468_vm2 = vmmov 0   ;;  %s632_s1 = inlined_call_operand.vmem [shape: f32[4,128], index: 1, kind: input, shape index: {}]   ;;  %s633_s0 = inlined_call_operand.vmem [shape: f32[8,4], index: 0, kind: input, shape index: {}]   ;;  %s634_s3 = inlined_call_operand.vmem [shape: f32[128,128], index: 3, kind: input, shape index: {}]   ;;  %s635_s5 = inlined_call_operand.vmem [shape: f32[128,2], index: 5, kind: input, shape index: {}]   ;;  %s636_s2 = inlined_call_operand.vmem [shape: f32[1,128], index: 2, kind: input, shape index: {}]   ;;  %s637_s4 = inlined_call_operand.vmem [shape: f32[1,128], index: 4, kind: input, shape index: {}]   ;;  %s638_s6 = inlined_call_operand.vmem [shape: f32[8,2], index: 6, kind: output, shape index: {}]  }
   0x1   :  { %337 = vmatprep.subr.mxu0 %v467_v0  ;;  %v24_v1 = vld [vmem:[%s632_s1] sm:$0xf]  ;;  %339 = vmatprep.mubr.msk.f32.mxu0 %vm468_vm2, %v467_v0  ;;  %v469_v4 = vmov 0.0|0.0   ;;  %v112_v5 = vld [vmem:[%s634_s3 + $0x8] sm:$0xff]  ;;  %v113_v6 = vld [vmem:[%s634_s3 + $0x10] sm:$0xff]  ;;  %vm291_vm3 = vcmask 15360  }
   0x2   :  { %v23_v2 = vld [vmem:[%s633_s0] sm:$0xff]  ;;  %338 = vmatpush3.msk.msra.mxu0 %vm36_vm0, %v24_v1  ;;  %412 = vmatprep.subr.bf16.mxu1 %v469_v4  ;;  %v114_v7 = vld [vmem:[%s634_s3 + $0x18] sm:$0xff]  ;;  %v116_v11 = vld [vmem:[%s634_s3 + $0x28] sm:$0xff] }
   0x3   :  { %v111_v3 = vld [vmem:[%s634_s3] sm:$0xff]  ;;  %340 = vmatmul.mubr.msk.f32.vlgmr.msra.gmra.mrb[0].mxu0 %vm32_vm1, %v23_v2  ;;  %374 = vmatprep.mubr.msk.f32.mxu1 %vm468_vm2, %v467_v0  ;;  %v416_v9 = vpack.c.bf16 %v114_v7, %v113_v6  ;;  %v117_v13 = vld [vmem:[%s634_s3 + $0x30] sm:$0xff]  ;;  %v118_v14 = vld [vmem:[%s634_s3 + $0x38] sm:$0xff] }
   0x4   :  { %v413_v8 = vpack.c.bf16 %v112_v5, %v111_v3  ;;  %436 = vmatprep.subr.bf16.mxu0 %v469_v4  ;;  %409 = vmatprep.mubr.msk.f32.mxu0 %vm468_vm2, %v467_v0  ;;  %v115_v10 = vld [vmem:[%s634_s3 + $0x20] sm:$0xff]  ;;  %v422_v15 = vpack.c.bf16 %v118_v14, %v117_v13  ;;  %v120_v17 = vld [vmem:[%s634_s3 + $0x48] sm:$0xff]  ;;  %v121_v19 = vld [vmem:[%s634_s3 + $0x50] sm:$0xff] }
   0x5   :  { %v419_v12 = vpack.c.bf16 %v116_v11, %v115_v10  ;;  %v119_v16 = vld [vmem:[%s634_s3 + $0x40] sm:$0xff]  ;;  %v122_v20 = vld [vmem:[%s634_s3 + $0x58] sm:$0xff]  ;;  %v124_v23 = vld [vmem:[%s634_s3 + $0x68] sm:$0xff] }
   0x6   :  { %414 = vmatpush3.bf16.msra.mxu1 %v413_v8  ;;  %v425_v18 = vpack.c.bf16 %v120_v17, %v119_v16  ;;  %v428_v21 = vpack.c.bf16 %v122_v20, %v121_v19  ;;  %v123_v22 = vld [vmem:[%s634_s3 + $0x60] sm:$0xff]  ;;  %v125_v25 = vld [vmem:[%s634_s3 + $0x70] sm:$0xff]  ;;  %v126_v26 = vld [vmem:[%s634_s3 + $0x78] sm:$0xff] }
   0x7   :  { %415 = vmatprep.subr.bf16.mxu1 %v469_v4  ;;  %v431_v24 = vpack.c.bf16 %v124_v23, %v123_v22  ;;  %v434_v27 = vpack.c.bf16 %v126_v26, %v125_v25  ;;  %v205_v28 = vld [vmem:[%s635_s5] sm:$0xff]  ;;  %v206_v29 = vld [vmem:[%s635_s5 + $0x8] sm:$0xff]  ;;  %v207_v30 = vld [vmem:[%s635_s5 + $0x10] sm:$0xff] }
   0x8   :  { %v437_v31 = vpack.c.bf16 %v206_v29, %v205_v28  ;;  %v208_v32 = vld [vmem:[%s635_s5 + $0x18] sm:$0xff]  ;;  %v209_v34 = vld [vmem:[%s635_s5 + $0x20] sm:$0xff]  ;;  %v210_v35 = vld [vmem:[%s635_s5 + $0x28] sm:$0xff] }
   0x9   :  { %v440_v33 = vpack.c.bf16 %v208_v32, %v207_v30  ;;  %v443_v36 = vpack.c.bf16 %v210_v35, %v209_v34  ;;  %v211_v37 = vld [vmem:[%s635_s5 + $0x30] sm:$0xff]  ;;  %v212_v38 = vld [vmem:[%s635_s5 + $0x38] sm:$0xff]  ;;  %v213_v40 = vld [vmem:[%s635_s5 + $0x40] sm:$0xff] }
   0xa   :  { %417 = vmatpush3.bf16.msra.mxu1 %v416_v9  ;;  %438 = vmatpush3.bf16.msra.mxu0 %v437_v31  ;;  %v446_v39 = vpack.c.bf16 %v212_v38, %v211_v37  ;;  %v214_v41 = vld [vmem:[%s635_s5 + $0x48] sm:$0xff]  ;;  %v297_v43 = vld [vmem:[%s636_s2] ss:$0 sm:$0xff]  ;;  %v215_v48 = vld [vmem:[%s635_s5 + $0x50] sm:$0xff] }
   0xb   :  { %418 = vmatprep.subr.bf16.mxu1 %v469_v4  ;;  %439 = vmatprep.subr.bf16.mxu0 %v469_v4  ;;  %v449_v42 = vpack.c.bf16 %v214_v41, %v213_v40  ;;  %v216_v49 = vld [vmem:[%s635_s5 + $0x58] sm:$0xff]  ;;  %v217_v51 = vld [vmem:[%s635_s5 + $0x60] sm:$0xff]  ;;  %v218_v52 = vld [vmem:[%s635_s5 + $0x68] sm:$0xff] }
   0xc   :  { %v452_v50 = vpack.c.bf16 %v216_v49, %v215_v48  ;;  %v455_v53 = vpack.c.bf16 %v218_v52, %v217_v51  ;;  %v219_v54 = vld [vmem:[%s635_s5 + $0x70] sm:$0xff]  ;;  %v220_v55 = vld [vmem:[%s635_s5 + $0x78] sm:$0xff]  ;;  %v300_v57 = vld [vmem:[%s637_s4] ss:$0 sm:$0xff] }
   0xd   :  { %v458_v56 = vpack.c.bf16 %v220_v55, %v219_v54 }
   0xe   :  { %420 = vmatpush3.bf16.msra.mxu1 %v419_v12  ;;  %441 = vmatpush3.bf16.msra.mxu0 %v440_v33 }
   0xf   :  { %421 = vmatprep.subr.bf16.mxu1 %v469_v4  ;;  %442 = vmatprep.subr.bf16.mxu0 %v469_v4 }
  0x12   :  { %423 = vmatpush3.bf16.msra.mxu1 %v422_v15  ;;  %444 = vmatpush3.bf16.msra.mxu0 %v443_v36 }
  0x13   :  { %424 = vmatprep.subr.bf16.mxu1 %v469_v4  ;;  %445 = vmatprep.subr.bf16.mxu0 %v469_v4 }
  0x16   :  { %426 = vmatpush3.bf16.msra.mxu1 %v425_v18  ;;  %447 = vmatpush3.bf16.msra.mxu0 %v446_v39 }
  0x17   :  { %427 = vmatprep.subr.bf16.mxu1 %v469_v4  ;;  %448 = vmatprep.subr.bf16.mxu0 %v469_v4 }
  0x1a   :  { %429 = vmatpush3.bf16.msra.mxu1 %v428_v21  ;;  %450 = vmatpush3.bf16.msra.mxu0 %v449_v42 }
  0x1b   :  { %430 = vmatprep.subr.bf16.mxu1 %v469_v4  ;;  %451 = vmatprep.subr.bf16.mxu0 %v469_v4 }
  0x1e   :  { %432 = vmatpush3.bf16.msra.mxu1 %v431_v24  ;;  %453 = vmatpush3.bf16.msra.mxu0 %v452_v50 }
  0x1f   :  { %433 = vmatprep.subr.bf16.mxu1 %v469_v4  ;;  %454 = vmatprep.subr.bf16.mxu0 %v469_v4 }
  0x22   :  { %435 = vmatpush3.bf16.msra.mxu1 %v434_v27  ;;  %456 = vmatpush3.bf16.msra.mxu0 %v455_v53 }
  0x23   :  { %457 = vmatprep.subr.bf16.mxu0 %v469_v4 }
  0x26   :  { %459 = vmatpush3.bf16.msra.mxu0 %v458_v56 }
  0xd6   :  { %v106_v44 = vpop.f32.mrb[0].mxu0 }
  0xd7   :  { %v107_v45 = vadd.f32 %v297_v43, %v106_v44  ;;  %v341_v46 = vpop.f32.mrb[1].mxu0 }
  0xd9   :  { %463 = vtanh.f32 %v107_v45 }
  0xe3   :  { %v464_v47 = vpop.eup %463 }
  0xe4   :  { %375 = vmatmul.mubr.f32.vlgmr.msra.gmra.mrb[0].mxu1 %v464_v47 }
 0x1b7   :  { %v200_v58 = vpop.f32.mrb[0].mxu1 }
 0x1b8   :  { %v201_v59 = vadd.f32 %v300_v57, %v200_v58  ;;  %v376_v60 = vpop.f32.mrb[1].mxu1 }
 0x1ba   :  { %465 = vtanh.f32 %v201_v59 }
 0x1c4   :  { %v466_v61 = vpop.eup %465 }
 0x1c5   :  { %410 = vmatmul.mubr.f32.vlgmr.msra.gmra.mrb[2].mxu0 %v466_v61 }
 0x298   :  { %v287_v62 = vpop.f32.mrb[2].mxu0 }
 0x299   :  { %292 = vst.msk [vmem:[%s638_s6] sm:$0xff] %vm291_vm3, %v287_v62  ;;  %v411_v63 = vpop.f32.mrb[3].mxu0 }

</bundles_post_ra>
